<compile_context>
chip_gen: v7x
topology: tpu7x:2x2x1
jax: 0.10.0
libtpu: 0.0.40
codegen_flags: <defaults>
</compile_context>

<pallas_src>
import jax
import jax.numpy as jnp
from jax import lax
from jax.experimental import pallas as pl
from jax.experimental.pallas import tpu as pltpu

KERNEL = 3
STRIDE = 2
_MIB = 1024 * 1024


def _out_dim(x):  # floor mode, no padding
    return (x - KERNEL) // STRIDE + 1


# ----------------------------- primary kernel (NCHW-native) -----------------------------

def _maxpool_nchw_kernel(x_ref, o_ref, t_ref):
    """x_ref: (bc, H, W) -> o_ref: (bc, H_out, W_out); t_ref: (bc, W, H_out) VMEM scratch."""
    _, h_out, w_out = o_ref.shape

    # Pool H (sublane axis) with 3 stride-2 ref loads.
    hp = x_ref[:, pl.ds(0, h_out, stride=STRIDE), :]
    for t in range(1, KERNEL):
        hp = jnp.maximum(hp, x_ref[:, pl.ds(t, h_out, stride=STRIDE), :])

    # (bc, H_out, W) -> (bc, W, H_out): put W on sublanes (XLU work, hidden under DMA).
    t_ref[...] = jnp.swapaxes(hp, 1, 2)

    # Pool W (now the sublane axis) with 3 stride-2 ref loads from the scratch.
    wp = t_ref[:, pl.ds(0, w_out, stride=STRIDE), :]
    for t in range(1, KERNEL):
        wp = jnp.maximum(wp, t_ref[:, pl.ds(t, w_out, stride=STRIDE), :])

    # (bc, W_out, H_out) -> (bc, H_out, W_out); single full-block store.
    o_ref[...] = jnp.swapaxes(wp, 1, 2).astype(o_ref.dtype)


def _vmem_limit_bytes():
    """Generation-aware scoped-VMEM request: 75% of physical, capped at 96 MiB."""
    try:
        cap = int(pltpu.get_tpu_info().vmem_capacity_bytes)
    except Exception:
        cap = 0
    if cap <= 0:
        cap = 64 * _MIB  # be conservative: assume v7x-sized VMEM
    return min(int(0.75 * cap), 96 * _MIB)


def _padded_bytes(sub, lane, itemsize):
    """VMEM footprint of one (sub, lane) slice under the native (8,128)-style tiling."""
    sub_tile = {4: 8, 2: 16, 1: 32}.get(itemsize, 8)
    sub_p = -(-sub // sub_tile) * sub_tile
    lane_p = -(-lane // 128) * 128
    return sub_p * lane_p * itemsize


def _pick_bc_tile(b, h, w, h_out, w_out, itemsize, vmem_limit):
    """Largest divisor of b whose per-step (padded) VMEM footprint fits the budget.

    Footprint per bc index: 2x input block (double-buffered) + 2x output block
    + transpose scratch + the two in-flight pooled temporaries.  Also capped so
    one input block is <= 16 MiB of HBM traffic, and so the grid has >= 2
    "parallel" steps whenever b >= 2 (keeps both v7x TensorCores busy).
    """
    per_bc = (2 * _padded_bytes(h, w, itemsize)
              + 2 * _padded_bytes(h_out, w_out, itemsize)
              + _padded_bytes(w, h_out, itemsize)        # t_ref scratch
              + _padded_bytes(h_out, w, itemsize)        # hp temporary
              + _padded_bytes(w_out, h_out, itemsize))   # wp temporary
    budget = max(vmem_limit - 4 * _MIB, 2 * _MIB)
    cap = max(1, budget // per_bc)
    cap = min(cap, max(1, (16 * _MIB) // max(h * w * itemsize, 1)))
    if b >= 2:
        cap = min(cap, b // 2)
    cap = max(1, min(cap, b))
    for t in range(cap, 0, -1):
        if b % t == 0:
            return t
    return 1


def _forward_nchw_impl(x_nchw):
    n, c, h, w = x_nchw.shape
    h_out, w_out = _out_dim(h), _out_dim(w)
    b = n * c
    itemsize = jnp.dtype(x_nchw.dtype).itemsize
    vmem_limit = _vmem_limit_bytes()
    bc_tile = _pick_bc_tile(b, h, w, h_out, w_out, itemsize, vmem_limit)
    # TODO(synk): no spatial (H) tiling — a single (H, W) image larger than ~VMEM/6
    # is not supported; Pool1-sized activations never get there.

    x3 = x_nchw.reshape(b, h, w)  # free: NCHW is already (N*C, H, W) row-major
    out3 = pl.pallas_call(
        _maxpool_nchw_kernel,
        out_shape=jax.ShapeDtypeStruct((b, h_out, w_out), x_nchw.dtype),
        grid_spec=pltpu.PrefetchScalarGridSpec(
            num_scalar_prefetch=0,
            grid=(b // bc_tile,),
            in_specs=[pl.BlockSpec((bc_tile, h, w), lambda i: (i, 0, 0))],
            out_specs=pl.BlockSpec((bc_tile, h_out, w_out), lambda i: (i, 0, 0)),
            scratch_shapes=[pltpu.VMEM((bc_tile, w, h_out), x_nchw.dtype)],
        ),
        compiler_params=pltpu.CompilerParams(
            dimension_semantics=("parallel",),
            vmem_limit_bytes=vmem_limit,
        ),
    )(x3)
    return out3.reshape(n, c, h_out, w_out)


# --------------------- fallback kernel (previously validated, (H,W,NC) layout) ---------------------

def _maxpool_hwb_kernel(x_ref, o_ref):
    """x_ref: (H, W, Bt) -> o_ref: (H_out, W_out, Bt)."""
    h, w, bt = x_ref.shape
    h_out, w_out, _ = o_ref.shape
    colp = x_ref[:, pl.ds(0, w_out, stride=STRIDE), :]
    for t in range(1, KERNEL):
        colp = jnp.maximum(colp, x_ref[:, pl.ds(t, w_out, stride=STRIDE), :])

    def h_tap(t):
        q = 0 if (t + 2 * h_out) <= h else 1
        slab = lax.slice_in_dim(colp, t - q, t - q + 2 * h_out, axis=0)
        return slab.reshape(h_out, 2, w_out, bt)[:, q]

    out = h_tap(0)
    for t in range(1, KERNEL):
        out = jnp.maximum(out, h_tap(t))
    o_ref[...] = out.astype(o_ref.dtype)


def _forward_hwb_impl(x_nchw):
    n, c, h, w = x_nchw.shape
    h_out, w_out = _out_dim(h), _out_dim(w)
    b = n * c
    if b <= 512 or b % 256 != 0:
        b_tile = b
    else:
        per_lane = h * w * jnp.dtype(x_nchw.dtype).itemsize
        b_tile = max(256, (8 * _MIB // max(per_lane, 1)) // 256 * 256)
        b_tile = min(b_tile, b)
        while b % b_tile:
            b_tile -= 256
    x_hwb = jnp.transpose(x_nchw.reshape(b, h, w), (1, 2, 0))
    out_hwb = pl.pallas_call(
        _maxpool_hwb_kernel,
        out_shape=jax.ShapeDtypeStruct((h_out, w_out, b), x_nchw.dtype),
        grid_spec=pl.GridSpec(
            grid=(b // b_tile,),
            in_specs=[pl.BlockSpec((h, w, b_tile), lambda i: (0, 0, i))],
            out_specs=pl.BlockSpec((h_out, w_out, b_tile), lambda i: (0, 0, i)),
        ),
        compiler_params=pltpu.CompilerParams(
            dimension_semantics=("parallel",),
            vmem_limit_bytes=_vmem_limit_bytes(),
        ),
    )(x_hwb)
    return jnp.transpose(out_hwb, (2, 0, 1)).reshape(n, c, h_out, w_out)


# ----------------------------------- dispatcher -----------------------------------

_forward_nchw = jax.jit(_forward_nchw_impl)
_forward_hwb = jax.jit(_forward_hwb_impl)
_PATH_OK = {}  # (shape, dtype) -> True if the NCHW-native kernel compiled on this machine


def pool1_forward(x_nchw):
    """Pool1.forward(x): nn.MaxPool2d(kernel_size=3, stride=2) on an NCHW tensor."""
    n, c, h, w = x_nchw.shape
    assert h >= KERNEL and w >= KERNEL, "MaxPool2d(3,2) requires H, W >= 3"
    key = (tuple(x_nchw.shape), str(jnp.dtype(x_nchw.dtype)))
    ok = _PATH_OK.get(key)
    if ok is None:
        try:
            out = jax.block_until_ready(_forward_nchw(x_nchw))
            _PATH_OK[key] = True
            return out
        except Exception:
            _PATH_OK[key] = False
            return _forward_hwb(x_nchw)
    return _forward_nchw(x_nchw) if ok else _forward_hwb(x_nchw)


if __name__ == "__main__":
    # Pool1 has no learnable parameters, so there is nothing to initialize.
    key = jax.random.PRNGKey(0)
    x = jax.random.normal(key, (2, 4, 16, 16), dtype=jnp.float32)  # NCHW
    y = jax.block_until_ready(pool1_forward(x))
    ref = lax.reduce_window(x, -jnp.inf, lax.max,
                            window_dimensions=(1, 1, KERNEL, KERNEL),
                            window_strides=(1, 1, STRIDE, STRIDE),
                            padding="VALID")
    assert y.shape == (2, 4, 7, 7), y.shape
    assert jnp.allclose(y, ref), "Pallas maxpool mismatch vs reference"

    # Odd spatial size exercises the odd-H/W bound handling.
    x2 = jax.random.normal(jax.random.PRNGKey(0), (2, 3, 15, 15), dtype=jnp.float32)
    y2 = jax.block_until_ready(pool1_forward(x2))
    ref2 = lax.reduce_window(x2, -jnp.inf, lax.max,
                             window_dimensions=(1, 1, KERNEL, KERNEL),
                             window_strides=(1, 1, STRIDE, STRIDE),
                             padding="VALID")
    assert y2.shape == (2, 3, 7, 7), y2.shape
    assert jnp.allclose(y2, ref2), "Pallas maxpool mismatch vs reference (odd H/W)"

    print("KERNEL_OK")
</pallas_src>

<mosaic_0001>
module attributes {stable_mosaic.version = 11 : i64} {
  func.func @_maxpool_nchw_kernel(%arg0: i32, %arg1: memref<4x16x16xf32, #tpu.memory_space<vmem>>, %arg2: memref<4x7x7xf32, #tpu.memory_space<vmem>>, %arg3: memref<4x16x7xf32, #tpu.memory_space<vmem>>) attributes {dimension_semantics = [#tpu.dimension_semantics<parallel>], iteration_bounds = array<i64: 2>, scalar_prefetch = 0 : i64, scratch_operands = 1 : i64, tpu.core_type = #tpu.core_type<tc>, window_params = [{transform_indices = @transform_0, window_bounds = array<i64: 4, 16, 16>}, {transform_indices = @transform_1, window_bounds = array<i64: 4, 7, 7>}]} {
    %c0 = arith.constant 0 : index
    %c0_0 = arith.constant 0 : index
    %c0_1 = arith.constant 0 : index
    %0 = tpu.strided_load %arg1[%c0, %c0_0, %c0_1] {strides = array<i32: 1, 2, 1>} : memref<4x16x16xf32, #tpu.memory_space<vmem>>, vector<4x7x16xf32>
    %c0_2 = arith.constant 0 : index
    %c1 = arith.constant 1 : index
    %c0_3 = arith.constant 0 : index
    %1 = tpu.strided_load %arg1[%c0_2, %c1, %c0_3] {strides = array<i32: 1, 2, 1>} : memref<4x16x16xf32, #tpu.memory_space<vmem>>, vector<4x7x16xf32>
    %2 = arith.maximumf %0, %1 : vector<4x7x16xf32>
    %c0_4 = arith.constant 0 : index
    %c2 = arith.constant 2 : index
    %c0_5 = arith.constant 0 : index
    %3 = tpu.strided_load %arg1[%c0_4, %c2, %c0_5] {strides = array<i32: 1, 2, 1>} : memref<4x16x16xf32, #tpu.memory_space<vmem>>, vector<4x7x16xf32>
    %4 = arith.maximumf %2, %3 : vector<4x7x16xf32>
    %5 = tpu.transpose %4, [0, 2, 1] : vector<4x7x16xf32> -> vector<4x16x7xf32>
    %c0_6 = arith.constant 0 : index
    %c0_7 = arith.constant 0 : index
    %c0_8 = arith.constant 0 : index
    %6 = vector.load %arg3[%c0_6, %c0_7, %c0_8] : memref<4x16x7xf32, #tpu.memory_space<vmem>>, vector<4x16x7xf32>
    tpu.vector_store %arg3[%c0_6, %c0_7, %c0_8], %5 {strides = array<i32>} : memref<4x16x7xf32, #tpu.memory_space<vmem>>, vector<4x16x7xf32>,
    %c0_9 = arith.constant 0 : index
    %c0_10 = arith.constant 0 : index
    %c0_11 = arith.constant 0 : index
    %7 = tpu.strided_load %arg3[%c0_9, %c0_10, %c0_11] {strides = array<i32: 1, 2, 1>} : memref<4x16x7xf32, #tpu.memory_space<vmem>>, vector<4x7x7xf32>
    %c0_12 = arith.constant 0 : index
    %c1_13 = arith.constant 1 : index
    %c0_14 = arith.constant 0 : index
    %8 = tpu.strided_load %arg3[%c0_12, %c1_13, %c0_14] {strides = array<i32: 1, 2, 1>} : memref<4x16x7xf32, #tpu.memory_space<vmem>>, vector<4x7x7xf32>
    %9 = arith.maximumf %7, %8 : vector<4x7x7xf32>
    %c0_15 = arith.constant 0 : index
    %c2_16 = arith.constant 2 : index
    %c0_17 = arith.constant 0 : index
    %10 = tpu.strided_load %arg3[%c0_15, %c2_16, %c0_17] {strides = array<i32: 1, 2, 1>} : memref<4x16x7xf32, #tpu.memory_space<vmem>>, vector<4x7x7xf32>
    %11 = arith.maximumf %9, %10 : vector<4x7x7xf32>
    %12 = tpu.transpose %11, [0, 2, 1] : vector<4x7x7xf32> -> vector<4x7x7xf32>
    %c0_18 = arith.constant 0 : index
    %c0_19 = arith.constant 0 : index
    %c0_20 = arith.constant 0 : index
    %13 = vector.load %arg2[%c0_18, %c0_19, %c0_20] : memref<4x7x7xf32, #tpu.memory_space<vmem>>, vector<4x7x7xf32>
    tpu.vector_store %arg2[%c0_18, %c0_19, %c0_20], %12 {strides = array<i32>} : memref<4x7x7xf32, #tpu.memory_space<vmem>>, vector<4x7x7xf32>,
    return
  }
  func.func @transform_0(%arg0: i32) -> (i32, i32, i32) {
    %c0_i32 = arith.constant 0 : i32
    %c0_i32_0 = arith.constant 0 : i32
    %c0_i32_1 = arith.constant 0 : i32
    return %arg0, %c0_i32, %c0_i32_0 : i32, i32, i32
  }
  func.func @transform_1(%arg0: i32) -> (i32, i32, i32) {
    %c0_i32 = arith.constant 0 : i32
    %c0_i32_0 = arith.constant 0 : i32
    %c0_i32_1 = arith.constant 0 : i32
    return %arg0, %c0_i32, %c0_i32_0 : i32, i32, i32
  }
}

module attributes {stable_mosaic.version = 11 : i64} {
  func.func @_maxpool_hwb_kernel(%arg0: i32, %arg1: memref<16x16x8xf32, #tpu.memory_space<vmem>>, %arg2: memref<7x7x8xf32, #tpu.memory_space<vmem>>) attributes {dimension_semantics = [#tpu.dimension_semantics<parallel>], iteration_bounds = array<i64: 1>, scalar_prefetch = 0 : i64, scratch_operands = 0 : i64, tpu.core_type = #tpu.core_type<tc>, window_params = [{transform_indices = @transform_0, window_bounds = array<i64: 16, 16, 8>}, {transform_indices = @transform_1, window_bounds = array<i64: 7, 7, 8>}]} {
    %c0 = arith.constant 0 : index
    %c0_0 = arith.constant 0 : index
    %c0_1 = arith.constant 0 : index
    %0 = tpu.strided_load %arg1[%c0, %c0_0, %c0_1] {strides = array<i32: 1, 2, 1>} : memref<16x16x8xf32, #tpu.memory_space<vmem>>, vector<16x7x8xf32>
    %c0_2 = arith.constant 0 : index
    %c1 = arith.constant 1 : index
    %c0_3 = arith.constant 0 : index
    %1 = tpu.strided_load %arg1[%c0_2, %c1, %c0_3] {strides = array<i32: 1, 2, 1>} : memref<16x16x8xf32, #tpu.memory_space<vmem>>, vector<16x7x8xf32>
    %2 = arith.maximumf %0, %1 : vector<16x7x8xf32>
    %c0_4 = arith.constant 0 : index
    %c2 = arith.constant 2 : index
    %c0_5 = arith.constant 0 : index
    %3 = tpu.strided_load %arg1[%c0_4, %c2, %c0_5] {strides = array<i32: 1, 2, 1>} : memref<16x16x8xf32, #tpu.memory_space<vmem>>, vector<16x7x8xf32>
    %4 = arith.maximumf %2, %3 : vector<16x7x8xf32>
    %5 = vector.extract_strided_slice %4 {offsets = [0, 0, 0], sizes = [14, 7, 8], strides = [1, 1, 1]} : vector<16x7x8xf32> to vector<14x7x8xf32>
    %6 = vector.shape_cast %5 : vector<14x7x8xf32> to vector<7x2x7x8xf32>
    %7 = vector.extract_strided_slice %6 {offsets = [0, 0, 0, 0], sizes = [7, 1, 7, 8], strides = [1, 1, 1, 1]} : vector<7x2x7x8xf32> to vector<7x1x7x8xf32>
    %8 = vector.shape_cast %7 : vector<7x1x7x8xf32> to vector<7x7x8xf32>
    %9 = vector.extract_strided_slice %4 {offsets = [1, 0, 0], sizes = [14, 7, 8], strides = [1, 1, 1]} : vector<16x7x8xf32> to vector<14x7x8xf32>
    %10 = vector.shape_cast %9 : vector<14x7x8xf32> to vector<7x2x7x8xf32>
    %11 = vector.extract_strided_slice %10 {offsets = [0, 0, 0, 0], sizes = [7, 1, 7, 8], strides = [1, 1, 1, 1]} : vector<7x2x7x8xf32> to vector<7x1x7x8xf32>
    %12 = vector.shape_cast %11 : vector<7x1x7x8xf32> to vector<7x7x8xf32>
    %13 = arith.maximumf %8, %12 : vector<7x7x8xf32>
    %14 = vector.extract_strided_slice %4 {offsets = [2, 0, 0], sizes = [14, 7, 8], strides = [1, 1, 1]} : vector<16x7x8xf32> to vector<14x7x8xf32>
    %15 = vector.shape_cast %14 : vector<14x7x8xf32> to vector<7x2x7x8xf32>
    %16 = vector.extract_strided_slice %15 {offsets = [0, 0, 0, 0], sizes = [7, 1, 7, 8], strides = [1, 1, 1, 1]} : vector<7x2x7x8xf32> to vector<7x1x7x8xf32>
    %17 = vector.shape_cast %16 : vector<7x1x7x8xf32> to vector<7x7x8xf32>
    %18 = arith.maximumf %13, %17 : vector<7x7x8xf32>
    %c0_6 = arith.constant 0 : index
    %c0_7 = arith.constant 0 : index
    %c0_8 = arith.constant 0 : index
    %19 = vector.load %arg2[%c0_6, %c0_7, %c0_8] : memref<7x7x8xf32, #tpu.memory_space<vmem>>, vector<7x7x8xf32>
    tpu.vector_store %arg2[%c0_6, %c0_7, %c0_8], %18 {strides = array<i32>} : memref<7x7x8xf32, #tpu.memory_space<vmem>>, vector<7x7x8xf32>,
    return
  }
  func.func @transform_0(%arg0: i32) -> (i32, i32, i32) {
    %c0_i32 = arith.constant 0 : i32
    %c0_i32_0 = arith.constant 0 : i32
    %c0_i32_1 = arith.constant 0 : i32
    return %c0_i32, %c0_i32_0, %arg0 : i32, i32, i32
  }
  func.func @transform_1(%arg0: i32) -> (i32, i32, i32) {
    %c0_i32 = arith.constant 0 : i32
    %c0_i32_0 = arith.constant 0 : i32
    %c0_i32_1 = arith.constant 0 : i32
    return %c0_i32, %c0_i32_0, %arg0 : i32, i32, i32
  }
}

</mosaic_0001>

<bundles_post_ra>
// kernel: _forward_nchw_impl.1
= control target key start
LH: loop header
LB: loop body
LE: loop exit
PB: predicated region body
PF: predicated region fallthrough
CT: control target
= control target key end

     0   :  { %6 = vsyncpa [#allocation4], 0  ;;  %s802_s0 = inlined_call_operand.hbm [shape: f32[8,16,16], index: 0, kind: input, shape index: {}]   ;;  %s803_s1 = inlined_call_operand.vmem [shape: f32[8,7,7], index: 1, kind: output, shape index: {}]  }
   0x1   :  { %8 = vsyncpa [#allocation4 + $0x1], 0  ;;  %s687_s6 = smov 0   ;;  %s689_s7 = smov 0  }
   0x2   :  { %s691_s8 = smov 0   ;;  %s693_s9 = smov 0  }
   0x3 LB: > { %s539_s10 = sadd.s32 4294967295, %s672_s9   ;;  %s707_s11 = sadd.s32 1, %s672_s9   ;;  %s672_s9 = sphi %s693_s9, %s810_s9   ;;  %s668_s8 = sphi %s691_s8, %s809_s8   ;;  %s664_s7 = sphi %s689_s7, %s808_s7   ;;  %s660_s6 = sphi %s687_s6, %s807_s6  }
   0x4   : > { %s18_s12 = ssub.s32 %s672_s9, %s707_s11  ;;  %s21_s13 = sadd.s32 1, %s668_s8 }
   0x5   : > { %p19_p0 = scmp.eq.s32.totalorder %s18_s12, 0  ;;  %p28_p1 = scmp.ne.s32.totalorder %s668_s8, %s664_s7 }
   0x6   : > { %p29_p2 = scmp.eq.s32.totalorder %s672_s9, 0  ;;  %p34_p3 = scmp.ne.s32.totalorder %s664_s7, %s660_s6 }
   0x7   : > { %s717_s14 = scalar_select %p19_p0, %s668_s8, %s21_s13  }
   0x8   : > { %p30_p4 = por %p29_p2, %p28_p1  ;;  %p35_p5 = scmp.eq.s32.totalorder %s539_s10, 0 }
   0x9   : > { %p572_p6 = scmp.lt.s32.totalorder %s672_s9, 2  ;;  %s84_s16 = sand.u32 1, %s668_s8  }
   0xa   : > { %p722_p7 = por %p35_p5, %p34_p3  ;;  %s543_s17 = sshll.u32 %s84_s16, 6 }
   0xb   : > { %s565_s18 = sshll.u32 %s672_s9, 10  ;;  %s88_s22 = scalar_lea.vmem [#allocation3], %s543_s17 }
   0xc   : > { %s731_s21 = scalar_lea.hbm %s802_s0, %s565_s18  ;;  %s96_s23 = sshll.u32 %s88_s22, 4  ;;  %s733_s23 = int_to_ptr.vmem [resolvable:$true] %s96_s23 }
   0xd   : > { %p735_p8 = pnand %p572_p6, %p30_p4  ;;  %s740_s25 = scalar_lea.sflag [#allocation4], %s84_s16 }
   0xe   : > { %s608_s26 = scalar_lea.hbm %s731_s21, 1024  ;;  %s613_s29 = scalar_lea.hbm %s802_s0, 2048 }
   0xf   : > { %p609_p10 = scmp.ne.s32.totalorder %s731_s21, %s608_s26  ;;  %p610_p11 = pneg %p735_p8 }
  0x10   : > { %p614_p0 = scmp.lt.u32.totalorder %s731_s21, %s802_s0  ;;  %p615_p1 = scmp.lt.u32.totalorder %s613_s29, %s608_s26 }
  0x11   : > { %p611_p12 = pnand %p610_p11, %p609_p10  ;;  %p617_p3 = scmp.lt.u32.totalorder %s608_s26, %s731_s21 }
  0x12   : > { %p616_p2 = por %p615_p1, %p614_p0 }
  0x13   : > { %p612_p13 = pneg %p611_p12 }
  0x14   : > { %p618_p4 = por %p617_p3, %p616_p2 }
  0x16   : > { %p619_p5 = pnand %p618_p4, %p612_p13 }
  0x18   : > { %622 = shalt.err (!%p619_p5)
}
  0x19   : > { %s623_s3 = scalar_lea.vmem %s733_s23, 1024  ;;  %s674_s4 = smov [#allocation3]  }
  0x1a   : > { %p624_p6 = scmp.ne.s32.totalorder %s733_s23, %s623_s3  ;;  %s628_s5 = sshll.u32 %s674_s4, 4  ;;  %s629_s5 = int_to_ptr.vmem [resolvable:$false] %s628_s5 }
  0x1b   : > { %s630_s6 = scalar_lea.vmem %s629_s5, 2048  ;;  %p631_p9 = scmp.lt.s32.totalorder %s733_s23, %s629_s5 }
  0x1c   : > { %p626_p10 = pnand %p624_p6, %p610_p11  ;;  %p632_p0 = scmp.lt.s32.totalorder %s630_s6, %s623_s3 }
  0x1e   : > { %p627_p12 = pneg %p626_p10  ;;  %p633_p1 = por %p632_p0, %p631_p9 }
  0x20   : > { %p634_p2 = pnand %p633_p1, %p627_p12 }
  0x22   : > { %637 = shalt.err (!%p634_p2)
}
  0x23   : > { %s675_s12 = smov 128   ;;  %s676_s13 = smov 8  }
  0x24   : > { %571 = dma.hbm_to_vmem [thread:$0]  (!%p735_p8), %s731_s21, 1024, %s733_s23, %s740_s25, %s675_s12, %s675_s12, %s676_s13  }
  0x25   : > { %p104_p11 = scmp.lt.s32.totalorder %s672_s9, 3  ;;  %p806_p13 = scmp.ge.s32.totalorder %s672_s9, 1 }
  0x27   : > { %p105_p3 = pnand %p806_p13, %p104_p11 }
  0x28   : > { %s110_s16 = sand.u32 (!%p105_p3), 1, %s664_s7  }
  0x29   : > { %108 = sbr.rel (%p105_p3) target bundleno = 343 (0x157), region = 24  ;;  %s548_s17 = sshll.u32 (!%p105_p3), %s110_s16, 6 }
  0x2a   : > { %s111_s18 = scalar_lea.sflag (!%p105_p3), [#allocation4], %s110_s16  ;;  %s114_s19 = scalar_lea.vmem (!%p105_p3), [#allocation3], %s548_s17 }
  0x30   : > { %655 = dma.done.wait (%p722_p7), %s111_s18, 1024  }
  0x31   : > { %657 = vsyncadd (%p722_p7), %s111_s18, 4294966272  ;;  %v552_v0 = vld [vmem:[%s114_s19 + $0x20] ss:$2 sm:$0x7f]  ;;  %vm299_vm0 = vcmask 56320   ;;  %s549_s15 = sshll.u32 %s539_s10, 2 }
  0x32   : > { %v556_v1 = vld [vmem:[%s114_s19 + $0x21] ss:$2 sm:$0x7f]  ;;  %v560_v3 = vld [vmem:[%s114_s19 + $0x22] ss:$2 sm:$0x7f] }
  0x33   : > { %v157_v2 = vmax.f32 %v552_v0, %v556_v1  ;;  %v140_v4 = vld [vmem:[%s114_s19] ss:$2 sm:$0x7f]  ;;  %v554_v5 = vld [vmem:[%s114_s19 + $0x1] ss:$2 sm:$0x7f] }
  0x34   : > { %v558_v6 = vld [vmem:[%s114_s19 + $0x2] ss:$2 sm:$0x7f]  ;;  %v155_v8 = vmax.f32 %v140_v4, %v554_v5  ;;  %v553_v9 = vld [vmem:[%s114_s19 + $0x30] ss:$2 sm:$0x7f] }
  0x35   : > { %v169_v7 = vmax.f32 %v157_v2, %v560_v3  ;;  %v557_v10 = vld [vmem:[%s114_s19 + $0x31] ss:$2 sm:$0x7f]  ;;  %v561_v12 = vld [vmem:[%s114_s19 + $0x32] ss:$2 sm:$0x7f] }
  0x36   : > { %v158_v11 = vmax.f32 %v553_v9, %v557_v10  ;;  %v551_v13 = vld [vmem:[%s114_s19 + $0x10] ss:$2 sm:$0x7f]  ;;  %v167_v14 = vmax.f32 %v155_v8, %v558_v6  ;;  %v555_v15 = vld [vmem:[%s114_s19 + $0x11] ss:$2 sm:$0x7f] }
  0x37   : > { %235 = vxpose.xlu1.b32.start.end [1/1] (short) (narrow) %v169_v7, 16  ;;  %v156_v17 = vmax.f32 %v551_v13, %v555_v15  ;;  %v559_v18 = vld [vmem:[%s114_s19 + $0x12] ss:$2 sm:$0x7f]  ;;  %p135_p7 = scmp.lt.s32.totalorder %s549_s15, 7  ;;  %vm467_vm1 = vcmask 55296  }
  0x38   : > { %v170_v16 = vmax.f32 %v158_v11, %v561_v12  ;;  %171 = vxpose.xlu0.b32.start.end [1/1] (short) (narrow) %v167_v14, 16 }
  0x39   : > { %v168_v19 = vmax.f32 %v156_v17, %v559_v18  ;;  %s812_s15 = smov (!%p135_p7, %s549_s15), 7 }
  0x3a   : > { %s550_s20 = sshll.u32 %s812_s15, 3 }
  0x3b   : > { %s138_s23 = scalar_lea.vmem %s803_s1, %s550_s20 }
  0x3c   : > { %267 = vxpose.xlu1.b32.start.end [1/1] (short) (narrow) %v170_v16, 16 }
  0x3d   : > { %203 = vxpose.xlu0.b32.start.end [1/1] (short) (narrow) %v168_v19, 16 }
  0xb7   : > { %v251_v20 = vpop.trf.xlu1 }
  0xb8   : > { %304 = vst.msk [vmem:[#allocation2 + $0x20] sm:$0xff] %vm299_vm0, %v251_v20  ;;  %v187_v21 = vpop.trf.xlu0 }
  0xb9   : > { %300 = vst.msk [vmem:[#allocation2] sm:$0xff] %vm299_vm0, %v187_v21 }
  0xbb   : > { %v252_v22 = vpop.trf.xlu1 }
  0xbc   : > { %305 = vst.msk [vmem:[#allocation2 + $0x28] sm:$0xff] %vm299_vm0, %v252_v22  ;;  %v188_v23 = vpop.trf.xlu0 }
  0xbd   : > { %301 = vst.msk [vmem:[#allocation2 + $0x8] sm:$0xff] %vm299_vm0, %v188_v23 }
  0xbf   : > { %v283_v24 = vpop.trf.xlu1 }
  0xc0   : > { %306 = vst.msk [vmem:[#allocation2 + $0x30] sm:$0xff] %vm299_vm0, %v283_v24  ;;  %v219_v25 = vpop.trf.xlu0 }
  0xc1   : > { %302 = vst.msk [vmem:[#allocation2 + $0x10] sm:$0xff] %vm299_vm0, %v219_v25 }
  0xc3   : > { %v284_v26 = vpop.trf.xlu1  ;;  %v312_v27 = vld [vmem:[#allocation2 + $0x20] ss:$2 sm:$0x7f]  ;;  %v320_v28 = vld [vmem:[#allocation2 + $0x21] ss:$2 sm:$0x7f] }
  0xc4   : > { %307 = vst.msk [vmem:[#allocation2 + $0x38] sm:$0xff] %vm299_vm0, %v284_v26  ;;  %v220_v29 = vpop.trf.xlu0  ;;  %v308_v30 = vld [vmem:[#allocation2] ss:$2 sm:$0x7f]  ;;  %v325_v35 = vmax.f32 %v312_v27, %v320_v28 }
  0xc5   : > { %v316_v31 = vld [vmem:[#allocation2 + $0x1] ss:$2 sm:$0x7f]  ;;  %303 = vst.msk [vmem:[#allocation2 + $0x18] sm:$0xff] %vm299_vm0, %v220_v29 }
  0xc6   : > { %v323_v32 = vmax.f32 %v308_v30, %v316_v31  ;;  %v328_v33 = vld [vmem:[#allocation2 + $0x2] ss:$2 sm:$0x7f] }
  0xc7   : > { %v332_v36 = vld [vmem:[#allocation2 + $0x22] ss:$2 sm:$0x7f] }
  0xc8   : > { %v335_v34 = vmax.f32 %v323_v32, %v328_v33  ;;  %v337_v37 = vmax.f32 %v325_v35, %v332_v36 }
  0xca   : > { %339 = vxpose.xlu0.b32.start.end [1/1] (short) (narrow) %v335_v34, 8 }
  0xcb   : > { %v314_v38 = vld [vmem:[#allocation2 + $0x30] ss:$2 sm:$0x7f]  ;;  %v322_v39 = vld [vmem:[#allocation2 + $0x31] ss:$2 sm:$0x7f] }
  0xcc   : > { %v310_v40 = vld [vmem:[#allocation2 + $0x10] ss:$2 sm:$0x7f]  ;;  %v318_v41 = vld [vmem:[#allocation2 + $0x11] ss:$2 sm:$0x7f]  ;;  %v326_v45 = vmax.f32 %v314_v38, %v322_v39 }
  0xcd   : > { %v324_v42 = vmax.f32 %v310_v40, %v318_v41  ;;  %v330_v43 = vld [vmem:[#allocation2 + $0x12] ss:$2 sm:$0x7f] }
  0xce   : > { %403 = vxpose.xlu0.b32.start.end [1/1] (short) (narrow) %v337_v37, 8  ;;  %v334_v46 = vld [vmem:[#allocation2 + $0x32] ss:$2 sm:$0x7f] }
  0xcf   : > { %v336_v44 = vmax.f32 %v324_v42, %v330_v43  ;;  %v338_v47 = vmax.f32 %v326_v45, %v334_v46 }
  0xd1   : > { %371 = vxpose.xlu1.b32.start.end [1/1] (short) (narrow) %v336_v44, 8 }
  0xd5   : > { %435 = vxpose.xlu1.b32.start.end [1/1] (short) (narrow) %v338_v47, 8 }
 0x14a   : > { %v355_v48 = vpop.trf.xlu0 }
 0x14b   : > { %468 = vst.msk [vmem:[%s138_s23] sm:$0x7f] %vm467_vm1, %v355_v48 }
 0x14e   : > { %v419_v49 = vpop.trf.xlu0 }
 0x14f   : > { %470 = vst.msk [vmem:[%s138_s23 + $0x10] sm:$0x7f] %vm467_vm1, %v419_v49 }
 0x151   : > { %v387_v50 = vpop.trf.xlu1 }
 0x152   : > { %469 = vst.msk [vmem:[%s138_s23 + $0x8] sm:$0x7f] %vm467_vm1, %v387_v50 }
 0x155   : > { %v451_v51 = vpop.trf.xlu1 }
 0x156   : > { %471 = vst.msk [vmem:[%s138_s23 + $0x18] sm:$0x7f] %vm467_vm1, %v451_v51 }
 0x157 PF: > { %p11_p8 = scmp.ge.s32.totalorder %s707_s11, 4   ;;  %s807_s6 = smov %s664_s7 }
 0x158   : > { %s808_s7 = smov %s668_s8  ;;  %s809_s8 = smov %s717_s14 }
 0x159   : > { %s810_s9 = smov %s707_s11  ;;  %13 = sbr.rel (!%p11_p8) target bundleno = 3 (0x3), region = 86 }
 0x160   :  { %494 = vsyncpa [#allocation4], 1 }
 0x161   :  { %496 = vsyncpa [#allocation4 + $0x1], 1 }

// kernel: _forward_hwb_impl.1
= control target key start
LH: loop header
LB: loop body
LE: loop exit
PB: predicated region body
PF: predicated region fallthrough
CT: control target
= control target key end

     0   :  { %vm141_vm0 = vcmask 63488   ;;  %s370_s0 = inlined_call_operand.vmem [shape: f32[16,16,8], index: 0, kind: input, shape index: {}]   ;;  %s371_s1 = inlined_call_operand.vmem [shape: f32[7,7,8], index: 1, kind: output, shape index: {}]  }
   0x1   :  { %v8_v0 = vld [vmem:[%s370_s0] ss:$2 sm:$0x7f]  ;;  %v153_v1 = vld [vmem:[%s370_s0 + $0x10] ss:$2 sm:$0x7f] }
   0x2   :  { %v154_v2 = vld [vmem:[%s370_s0 + $0x20] ss:$2 sm:$0x7f]  ;;  %v167_v3 = vld [vmem:[%s370_s0 + $0x1] ss:$2 sm:$0x7f] }
   0x3   :  { %v168_v4 = vld [vmem:[%s370_s0 + $0x11] ss:$2 sm:$0x7f]  ;;  %v169_v5 = vld [vmem:[%s370_s0 + $0x21] ss:$2 sm:$0x7f]  ;;  %v67_v6 = vmax.f32 %v8_v0, %v167_v3 }
   0x4   :  { %v68_v7 = vmax.f32 %v153_v1, %v168_v4  ;;  %v69_v8 = vmax.f32 %v154_v2, %v169_v5  ;;  %v182_v9 = vld [vmem:[%s370_s0 + $0x2] ss:$2 sm:$0x7f]  ;;  %v183_v10 = vld [vmem:[%s370_s0 + $0x12] ss:$2 sm:$0x7f] }
   0x5   :  { %v184_v11 = vld [vmem:[%s370_s0 + $0x22] ss:$2 sm:$0x7f]  ;;  %v112_v12 = vmax.f32 %v67_v6, %v182_v9  ;;  %v155_v13 = vld [vmem:[%s370_s0 + $0x30] ss:$2 sm:$0x7f] }
   0x6   :  { %v113_v14 = vmax.f32 %v68_v7, %v183_v10  ;;  %v156_v15 = vld [vmem:[%s370_s0 + $0x40] ss:$2 sm:$0x7f]  ;;  %v170_v16 = vld [vmem:[%s370_s0 + $0x31] ss:$2 sm:$0x7f]  ;;  %v114_v17 = vmax.f32 %v69_v8, %v184_v11 }
   0x7   :  { %v171_v18 = vld [vmem:[%s370_s0 + $0x41] ss:$2 sm:$0x7f]  ;;  %v70_v19 = vmax.f32 %v155_v13, %v170_v16  ;;  %v185_v20 = vld [vmem:[%s370_s0 + $0x32] ss:$2 sm:$0x7f] }
   0x8   :  { %v127_v21 = vmax.f32 %v112_v12, %v113_v14  ;;  %v71_v22 = vmax.f32 %v156_v15, %v171_v18  ;;  %v186_v23 = vld [vmem:[%s370_s0 + $0x42] ss:$2 sm:$0x7f]  ;;  %v157_v24 = vld [vmem:[%s370_s0 + $0x50] ss:$2 sm:$0x7f] }
   0x9   :  { %v115_v25 = vmax.f32 %v70_v19, %v185_v20  ;;  %v158_v26 = vld [vmem:[%s370_s0 + $0x60] ss:$2 sm:$0x7f]  ;;  %v172_v27 = vld [vmem:[%s370_s0 + $0x51] ss:$2 sm:$0x7f] }
   0xa   :  { %v134_v28 = vmax.f32 %v127_v21, %v114_v17  ;;  %v116_v29 = vmax.f32 %v71_v22, %v186_v23  ;;  %v173_v30 = vld [vmem:[%s370_s0 + $0x61] ss:$2 sm:$0x7f]  ;;  %v72_v31 = vmax.f32 %v157_v24, %v172_v27  ;;  %v187_v32 = vld [vmem:[%s370_s0 + $0x52] ss:$2 sm:$0x7f] }
   0xb   :  { %v128_v33 = vmax.f32 %v114_v17, %v115_v25  ;;  %v73_v34 = vmax.f32 %v158_v26, %v173_v30  ;;  %v188_v35 = vld [vmem:[%s370_s0 + $0x62] ss:$2 sm:$0x7f]  ;;  %v159_v36 = vld [vmem:[%s370_s0 + $0x70] ss:$2 sm:$0x7f] }
   0xc   :  { %142 = vst.msk [vmem:[%s371_s1] sm:$0x7f] %vm141_vm0, %v134_v28  ;;  %v117_v37 = vmax.f32 %v72_v31, %v187_v32  ;;  %v160_v38 = vld [vmem:[%s370_s0 + $0x80] ss:$2 sm:$0x7f] }
   0xd   :  { %v174_v39 = vld [vmem:[%s370_s0 + $0x71] ss:$2 sm:$0x7f]  ;;  %v135_v40 = vmax.f32 %v128_v33, %v116_v29  ;;  %v118_v41 = vmax.f32 %v73_v34, %v188_v35  ;;  %v175_v42 = vld [vmem:[%s370_s0 + $0x81] ss:$2 sm:$0x7f] }
   0xe   :  { %v74_v43 = vmax.f32 %v159_v36, %v174_v39  ;;  %v189_v44 = vld [vmem:[%s370_s0 + $0x72] ss:$2 sm:$0x7f]  ;;  %v129_v45 = vmax.f32 %v116_v29, %v117_v37  ;;  %v75_v46 = vmax.f32 %v160_v38, %v175_v42  ;;  %v190_v47 = vld [vmem:[%s370_s0 + $0x82] ss:$2 sm:$0x7f] }
   0xf   :  { %v161_v48 = vld [vmem:[%s370_s0 + $0x90] ss:$2 sm:$0x7f]  ;;  %143 = vst.msk [vmem:[%s371_s1 + $0x8] sm:$0x7f] %vm141_vm0, %v135_v40 }
  0x10   :  { %v119_v49 = vmax.f32 %v74_v43, %v189_v44  ;;  %v162_v50 = vld [vmem:[%s370_s0 + $0xa0] ss:$2 sm:$0x7f]  ;;  %v176_v51 = vld [vmem:[%s370_s0 + $0x91] ss:$2 sm:$0x7f]  ;;  %v136_v52 = vmax.f32 %v129_v45, %v118_v41  ;;  %v120_v53 = vmax.f32 %v75_v46, %v190_v47 }
  0x11   :  { %v177_v54 = vld [vmem:[%s370_s0 + $0xa1] ss:$2 sm:$0x7f]  ;;  %v76_v55 = vmax.f32 %v161_v48, %v176_v51  ;;  %v191_v56 = vld [vmem:[%s370_s0 + $0x92] ss:$2 sm:$0x7f] }
  0x12   :  { %v130_v57 = vmax.f32 %v118_v41, %v119_v49  ;;  %v77_v58 = vmax.f32 %v162_v50, %v177_v54  ;;  %v192_v59 = vld [vmem:[%s370_s0 + $0xa2] ss:$2 sm:$0x7f]  ;;  %v163_v60 = vld [vmem:[%s370_s0 + $0xb0] ss:$2 sm:$0x7f] }
  0x13   :  { %144 = vst.msk [vmem:[%s371_s1 + $0x10] sm:$0x7f] %vm141_vm0, %v136_v52  ;;  %v121_v61 = vmax.f32 %v76_v55, %v191_v56  ;;  %v164_v62 = vld [vmem:[%s370_s0 + $0xc0] ss:$2 sm:$0x7f] }
  0x14   :  { %v178_v63 = vld [vmem:[%s370_s0 + $0xb1] ss:$2 sm:$0x7f]  ;;  %v137_v0 = vmax.f32 %v130_v57, %v120_v53  ;;  %v122_v1 = vmax.f32 %v77_v58, %v192_v59  ;;  %v179_v2 = vld [vmem:[%s370_s0 + $0xc1] ss:$2 sm:$0x7f] }
  0x15   :  { %v78_v3 = vmax.f32 %v163_v60, %v178_v63  ;;  %v193_v4 = vld [vmem:[%s370_s0 + $0xb2] ss:$2 sm:$0x7f]  ;;  %v131_v5 = vmax.f32 %v120_v53, %v121_v61  ;;  %v79_v6 = vmax.f32 %v164_v62, %v179_v2  ;;  %v194_v7 = vld [vmem:[%s370_s0 + $0xc2] ss:$2 sm:$0x7f] }
  0x16   :  { %v165_v8 = vld [vmem:[%s370_s0 + $0xd0] ss:$2 sm:$0x7f]  ;;  %145 = vst.msk [vmem:[%s371_s1 + $0x18] sm:$0x7f] %vm141_vm0, %v137_v0 }
  0x17   :  { %v123_v9 = vmax.f32 %v78_v3, %v193_v4  ;;  %v166_v10 = vld [vmem:[%s370_s0 + $0xe0] ss:$2 sm:$0x7f]  ;;  %v180_v11 = vld [vmem:[%s370_s0 + $0xd1] ss:$2 sm:$0x7f]  ;;  %v138_v12 = vmax.f32 %v131_v5, %v122_v1  ;;  %v124_v13 = vmax.f32 %v79_v6, %v194_v7 }
  0x18   :  { %v181_v14 = vld [vmem:[%s370_s0 + $0xe1] ss:$2 sm:$0x7f]  ;;  %v80_v15 = vmax.f32 %v165_v8, %v180_v11  ;;  %v195_v16 = vld [vmem:[%s370_s0 + $0xd2] ss:$2 sm:$0x7f] }
  0x19   :  { %v132_v17 = vmax.f32 %v122_v1, %v123_v9  ;;  %v81_v18 = vmax.f32 %v166_v10, %v181_v14  ;;  %v196_v19 = vld [vmem:[%s370_s0 + $0xe2] ss:$2 sm:$0x7f]  ;;  %146 = vst.msk [vmem:[%s371_s1 + $0x20] sm:$0x7f] %vm141_vm0, %v138_v12 }
  0x1a   :  { %v125_v20 = vmax.f32 %v80_v15, %v195_v16 }
  0x1b   :  { %v139_v21 = vmax.f32 %v132_v17, %v124_v13  ;;  %v126_v22 = vmax.f32 %v81_v18, %v196_v19 }
  0x1c   :  { %v133_v23 = vmax.f32 %v124_v13, %v125_v20 }
  0x1d   :  { %147 = vst.msk [vmem:[%s371_s1 + $0x28] sm:$0x7f] %vm141_vm0, %v139_v21 }
  0x1e   :  { %v140_v24 = vmax.f32 %v133_v23, %v126_v22 }
  0x20   :  { %148 = vst.msk [vmem:[%s371_s1 + $0x30] sm:$0x7f] %vm141_vm0, %v140_v24 }

</bundles_post_ra>
